<compile_context>
chip_gen: v7x
topology: tpu7x:2x2x1
jax: 0.10.0
libtpu: 0.0.40
codegen_flags: <defaults>
</compile_context>

<pallas_src>
import jax
import jax.numpy as jnp
from jax.experimental import pallas as pl
from jax.experimental.pallas import tpu as pltpu

EPS = 1e-5
VMEM_LIMIT = 32 * 1024 * 1024  # safe on v5e/v6e (128 MiB) and v7x (64 MiB)


# ----------------------------------------------------------------------------
# Pass 1: per-hidden-channel sum / sum-of-squares of y1 = W1 @ x  (global BN1)
# ----------------------------------------------------------------------------
def _stats1_kernel(x_ref, w1t_ref, sum_ref, sq_ref):
    @pl.when(pl.program_id(1) == 0)
    def _():
        sum_ref[...] = jnp.zeros_like(sum_ref)
        sq_ref[...] = jnp.zeros_like(sq_ref)

    x = x_ref[0]                                                        # [C, TP]
    y1 = jnp.dot(w1t_ref[...], x, preferred_element_type=jnp.float32)  # [Hd, TP]
    sum_ref[0] = sum_ref[0] + jnp.sum(y1, axis=-1, keepdims=True)
    sq_ref[0] = sq_ref[0] + jnp.sum(y1 * y1, axis=-1, keepdims=True)


# ----------------------------------------------------------------------------
# Pass 2: per-output-channel sum / sumsq of y2 = W2 @ relu(a1*y1 + b1)
# ----------------------------------------------------------------------------
def _stats2_kernel(x_ref, w1t_ref, a1_ref, b1_ref, w2t_ref, sum_ref, sq_ref):
    @pl.when(pl.program_id(1) == 0)
    def _():
        sum_ref[...] = jnp.zeros_like(sum_ref)
        sq_ref[...] = jnp.zeros_like(sq_ref)

    x = x_ref[0]                                                        # [C, TP]
    y1 = jnp.dot(w1t_ref[...], x, preferred_element_type=jnp.float32)  # [Hd, TP]
    h = jnp.maximum(y1 * a1_ref[...] + b1_ref[...], 0.0)               # fused BN1
    y2 = jnp.dot(w2t_ref[...], h, preferred_element_type=jnp.float32)  # [C, TP]
    sum_ref[0] = sum_ref[0] + jnp.sum(y2, axis=-1, keepdims=True)
    sq_ref[0] = sq_ref[0] + jnp.sum(y2 * y2, axis=-1, keepdims=True)


# ----------------------------------------------------------------------------
# Pass 3: full forward + residual, lane-dense output store
# ----------------------------------------------------------------------------
def _out_kernel(x_ref, w1t_ref, a1_ref, b1_ref, w2t_ref, a2_ref, b2_ref, o_ref):
    x = x_ref[0]                                                        # [C, TP]
    y1 = jnp.dot(w1t_ref[...], x, preferred_element_type=jnp.float32)  # [Hd, TP]
    h = jnp.maximum(y1 * a1_ref[...] + b1_ref[...], 0.0)               # fused BN1
    y2 = jnp.dot(w2t_ref[...], h, preferred_element_type=jnp.float32)  # [C, TP]
    o_ref[0] = x + jnp.maximum(y2 * a2_ref[...] + b2_ref[...], 0.0)    # fused BN2 + residual


def _pick_tile(hw):
    for tp in (2048, 1024, 512, 256, 128):
        if hw % tp == 0:
            return tp
    return hw  # fall back to full extent (block dim == array dim is legal)


def cnn_feed_forward(x_nchw, w1, gamma1, beta1, w2, gamma2, beta2):
    """x_nchw: [N, C, H, W]; w1: [C, hidden]; w2: [hidden, C]; BN affine vectors."""
    N, C, H, W = x_nchw.shape
    hidden = w1.shape[1]
    HW = H * W
    TP = _pick_tile(HW)
    NT = HW // TP
    P = N * HW

    # Free reshape (no transpose): NCHW is already channels-major per sample.
    x3 = x_nchw.reshape(N, C, HW).astype(jnp.float32)
    w1t = jnp.asarray(w1, jnp.float32).T        # [hidden, C]
    w2t = jnp.asarray(w2, jnp.float32).T        # [C, hidden]

    x_spec = pl.BlockSpec((1, C, TP), lambda n, t: (n, 0, t))
    w1_spec = pl.BlockSpec((hidden, C), lambda n, t: (0, 0))
    w2_spec = pl.BlockSpec((C, hidden), lambda n, t: (0, 0))
    col_h = pl.BlockSpec((hidden, 1), lambda n, t: (0, 0))
    col_c = pl.BlockSpec((C, 1), lambda n, t: (0, 0))

    acc_params = pltpu.CompilerParams(
        dimension_semantics=("parallel", "arbitrary"),
        vmem_limit_bytes=VMEM_LIMIT)
    par_params = pltpu.CompilerParams(
        dimension_semantics=("parallel", "parallel"),
        vmem_limit_bytes=VMEM_LIMIT)

    # ---- Pass 1: global BN1 batch stats (per-n partial accumulators) ------
    sum1_p, sq1_p = pl.pallas_call(
        _stats1_kernel,
        out_shape=(jax.ShapeDtypeStruct((N, hidden, 1), jnp.float32),
                   jax.ShapeDtypeStruct((N, hidden, 1), jnp.float32)),
        grid=(N, NT),
        in_specs=[x_spec, w1_spec],
        out_specs=(pl.BlockSpec((1, hidden, 1), lambda n, t: (n, 0, 0)),
                   pl.BlockSpec((1, hidden, 1), lambda n, t: (n, 0, 0))),
        compiler_params=acc_params,
    )(x3, w1t)

    sum1 = jnp.sum(sum1_p[:, :, 0], axis=0)             # [hidden] (tiny glue)
    sumsq1 = jnp.sum(sq1_p[:, :, 0], axis=0)
    mean1 = sum1 / P
    var1 = jnp.maximum(sumsq1 / P - mean1 * mean1, 0.0)  # biased batch variance
    a1 = gamma1 * jax.lax.rsqrt(var1 + EPS)              # fused BN scale
    b1 = beta1 - mean1 * a1                              # fused BN shift
    a1 = a1.reshape(hidden, 1).astype(jnp.float32)
    b1 = b1.reshape(hidden, 1).astype(jnp.float32)

    # ---- Pass 2: global BN2 batch stats ------------------------------------
    sum2_p, sq2_p = pl.pallas_call(
        _stats2_kernel,
        out_shape=(jax.ShapeDtypeStruct((N, C, 1), jnp.float32),
                   jax.ShapeDtypeStruct((N, C, 1), jnp.float32)),
        grid=(N, NT),
        in_specs=[x_spec, w1_spec, col_h, col_h, w2_spec],
        out_specs=(pl.BlockSpec((1, C, 1), lambda n, t: (n, 0, 0)),
                   pl.BlockSpec((1, C, 1), lambda n, t: (n, 0, 0))),
        compiler_params=acc_params,
    )(x3, w1t, a1, b1, w2t)

    sum2 = jnp.sum(sum2_p[:, :, 0], axis=0)              # [C]
    sumsq2 = jnp.sum(sq2_p[:, :, 0], axis=0)
    mean2 = sum2 / P
    var2 = jnp.maximum(sumsq2 / P - mean2 * mean2, 0.0)
    a2 = gamma2 * jax.lax.rsqrt(var2 + EPS)
    b2 = beta2 - mean2 * a2
    a2 = a2.reshape(C, 1).astype(jnp.float32)
    b2 = b2.reshape(C, 1).astype(jnp.float32)

    # ---- Pass 3: BN1+ReLU+conv2+BN2+ReLU+residual, lane-dense output ------
    out3 = pl.pallas_call(
        _out_kernel,
        out_shape=jax.ShapeDtypeStruct((N, C, HW), jnp.float32),
        grid=(N, NT),
        in_specs=[x_spec, w1_spec, col_h, col_h, w2_spec, col_c, col_c],
        out_specs=pl.BlockSpec((1, C, TP), lambda n, t: (n, 0, t)),
        compiler_params=par_params,
    )(x3, w1t, a1, b1, w2t, a2, b2)

    return out3.reshape(N, C, H, W)   # free reshape, no transpose


def _reference(x, w1, gamma1, beta1, w2, gamma2, beta2):
    """Pure-JAX reference mirroring PyTorch training-mode forward."""
    N, C, H, W = x.shape
    xf = jnp.transpose(x, (0, 2, 3, 1)).reshape(-1, C)
    y = xf @ w1
    m = jnp.mean(y, axis=0, keepdims=True)
    v = jnp.mean((y - m) ** 2, axis=0, keepdims=True)
    y = jnp.maximum((y - m) / jnp.sqrt(v + EPS) * gamma1 + beta1, 0.0)
    y = y @ w2
    m = jnp.mean(y, axis=0, keepdims=True)
    v = jnp.mean((y - m) ** 2, axis=0, keepdims=True)
    y = jnp.maximum((y - m) / jnp.sqrt(v + EPS) * gamma2 + beta2, 0.0)
    out = xf + y
    return jnp.transpose(out.reshape(N, H, W, C), (0, 3, 1, 2))


if __name__ == "__main__":
    # Small shapes consistent with the module: N=2, dim=4, H=W=16, hidden=32
    N, dim, Hs, Ws, hidden_dim = 2, 4, 16, 16, 32

    key = jax.random.PRNGKey(0)
    kx, kw1, kw2, kg1, kb1, kg2, kb2 = jax.random.split(key, 7)

    x = jax.random.normal(kx, (N, dim, Hs, Ws), dtype=jnp.float32)
    # Conv2d(dim, hidden, 1, bias=False) weight [hidden, dim, 1, 1] stored as
    # the equivalent [dim, hidden] matmul matrix (and [hidden, dim] for conv2).
    w1 = jax.random.normal(kw1, (dim, hidden_dim), dtype=jnp.float32) * 0.1
    w2 = jax.random.normal(kw2, (hidden_dim, dim), dtype=jnp.float32) * 0.1
    g1 = 1.0 + 0.1 * jax.random.normal(kg1, (hidden_dim,), dtype=jnp.float32)
    b1 = 0.1 * jax.random.normal(kb1, (hidden_dim,), dtype=jnp.float32)
    g2 = 1.0 + 0.1 * jax.random.normal(kg2, (dim,), dtype=jnp.float32)
    b2 = 0.1 * jax.random.normal(kb2, (dim,), dtype=jnp.float32)

    out = jax.block_until_ready(cnn_feed_forward(x, w1, g1, b1, w2, g2, b2))

    ref = _reference(x, w1, g1, b1, w2, g2, b2)
    assert out.shape == (N, dim, Hs, Ws)
    assert jnp.allclose(out, ref, atol=1e-4, rtol=1e-4), "mismatch vs reference"

    print("KERNEL_OK")
</pallas_src>

<mosaic_0001>
module attributes {stable_mosaic.version = 11 : i64} {
  func.func @_stats1_kernel(%arg0: i32, %arg1: i32, %arg2: memref<1x4x256xf32, #tpu.memory_space<vmem>>, %arg3: memref<32x4xf32, #tpu.memory_space<vmem>>, %arg4: memref<1x32x1xf32, #tpu.memory_space<vmem>>, %arg5: memref<1x32x1xf32, #tpu.memory_space<vmem>>) attributes {dimension_semantics = [#tpu.dimension_semantics<parallel>, #tpu.dimension_semantics<arbitrary>], iteration_bounds = array<i64: 2, 1>, scalar_prefetch = 0 : i64, scratch_operands = 0 : i64, tpu.core_type = #tpu.core_type<tc>, window_params = [{transform_indices = @transform_0, window_bounds = array<i64: 1, 4, 256>}, {pipeline_mode = #tpu.pipeline_mode<synchronous>, transform_indices = @transform_1, window_bounds = array<i64: 32, 4>}, {transform_indices = @transform_2, window_bounds = array<i64: 1, 32, 1>}, {transform_indices = @transform_3, window_bounds = array<i64: 1, 32, 1>}]} {
    %c0_i32 = arith.constant 0 : i32
    %0 = arith.cmpi eq, %arg1, %c0_i32 : i32
    %1 = arith.extui %0 : i1 to i32
    %c0_i32_0 = arith.constant 0 : i32
    %2 = arith.cmpi ne, %1, %c0_i32_0 : i32
    scf.if %2 {
      %cst_19 = arith.constant 0.000000e+00 : f32
      %24 = vector.broadcast %cst_19 : f32 to vector<1x32x1xf32>
      %c0_20 = arith.constant 0 : index
      %c0_21 = arith.constant 0 : index
      %c0_22 = arith.constant 0 : index
      %25 = vector.load %arg4[%c0_20, %c0_21, %c0_22] : memref<1x32x1xf32, #tpu.memory_space<vmem>>, vector<1x32x1xf32>
      tpu.vector_store %arg4[%c0_20, %c0_21, %c0_22], %24 {strides = array<i32>} : memref<1x32x1xf32, #tpu.memory_space<vmem>>, vector<1x32x1xf32>,
      %cst_23 = arith.constant 0.000000e+00 : f32
      %26 = vector.broadcast %cst_23 : f32 to vector<1x32x1xf32>
      %c0_24 = arith.constant 0 : index
      %c0_25 = arith.constant 0 : index
      %c0_26 = arith.constant 0 : index
      %27 = vector.load %arg5[%c0_24, %c0_25, %c0_26] : memref<1x32x1xf32, #tpu.memory_space<vmem>>, vector<1x32x1xf32>
      tpu.vector_store %arg5[%c0_24, %c0_25, %c0_26], %26 {strides = array<i32>} : memref<1x32x1xf32, #tpu.memory_space<vmem>>, vector<1x32x1xf32>,
    } else {
    }
    %c0 = arith.constant 0 : index
    %c0_1 = arith.constant 0 : index
    %c0_2 = arith.constant 0 : index
    %3 = vector.load %arg2[%c0, %c0_1, %c0_2] : memref<1x4x256xf32, #tpu.memory_space<vmem>>, vector<1x4x256xf32>
    %4 = vector.shape_cast %3 : vector<1x4x256xf32> to vector<4x256xf32>
    %c0_3 = arith.constant 0 : index
    %c0_4 = arith.constant 0 : index
    %5 = vector.load %arg3[%c0_3, %c0_4] : memref<32x4xf32, #tpu.memory_space<vmem>>, vector<32x4xf32>
    %cst = arith.constant dense<0.000000e+00> : vector<32x256xf32>
    %6 = tpu.matmul %5, %4, %cst {dimension_numbers = #tpu.dot_dimension_numbers<[1], [0], [0], [1], [0, 0, 1, 1], [], []>} : vector<32x4xf32>, vector<4x256xf32>, vector<32x256xf32> -> vector<32x256xf32>
    %c0_5 = arith.constant 0 : index
    %c0_6 = arith.constant 0 : index
    %c0_7 = arith.constant 0 : index
    %7 = vector.load %arg4[%c0_5, %c0_6, %c0_7] : memref<1x32x1xf32, #tpu.memory_space<vmem>>, vector<1x32x1xf32>
    %8 = vector.shape_cast %7 : vector<1x32x1xf32> to vector<32x1xf32>
    %cst_8 = arith.constant dense<0.000000e+00> : vector<32xf32>
    %9 = vector.multi_reduction <add>, %6, %cst_8 [1] : vector<32x256xf32> to vector<32xf32>
    %10 = vector.shape_cast %9 : vector<32xf32> to vector<32x1xf32>
    %11 = arith.addf %8, %10 : vector<32x1xf32>
    %c0_9 = arith.constant 0 : index
    %c0_10 = arith.constant 0 : index
    %c0_11 = arith.constant 0 : index
    %12 = vector.load %arg4[%c0_9, %c0_10, %c0_11] : memref<1x32x1xf32, #tpu.memory_space<vmem>>, vector<1x32x1xf32>
    %13 = vector.shape_cast %12 : vector<1x32x1xf32> to vector<32x1xf32>
    %14 = vector.shape_cast %11 : vector<32x1xf32> to vector<1x32x1xf32>
    tpu.vector_store %arg4[%c0_9, %c0_10, %c0_11], %14 {strides = array<i32>} : memref<1x32x1xf32, #tpu.memory_space<vmem>>, vector<1x32x1xf32>,
    %c0_12 = arith.constant 0 : index
    %c0_13 = arith.constant 0 : index
    %c0_14 = arith.constant 0 : index
    %15 = vector.load %arg5[%c0_12, %c0_13, %c0_14] : memref<1x32x1xf32, #tpu.memory_space<vmem>>, vector<1x32x1xf32>
    %16 = vector.shape_cast %15 : vector<1x32x1xf32> to vector<32x1xf32>
    %17 = arith.mulf %6, %6 : vector<32x256xf32>
    %cst_15 = arith.constant dense<0.000000e+00> : vector<32xf32>
    %18 = vector.multi_reduction <add>, %17, %cst_15 [1] : vector<32x256xf32> to vector<32xf32>
    %19 = vector.shape_cast %18 : vector<32xf32> to vector<32x1xf32>
    %20 = arith.addf %16, %19 : vector<32x1xf32>
    %c0_16 = arith.constant 0 : index
    %c0_17 = arith.constant 0 : index
    %c0_18 = arith.constant 0 : index
    %21 = vector.load %arg5[%c0_16, %c0_17, %c0_18] : memref<1x32x1xf32, #tpu.memory_space<vmem>>, vector<1x32x1xf32>
    %22 = vector.shape_cast %21 : vector<1x32x1xf32> to vector<32x1xf32>
    %23 = vector.shape_cast %20 : vector<32x1xf32> to vector<1x32x1xf32>
    tpu.vector_store %arg5[%c0_16, %c0_17, %c0_18], %23 {strides = array<i32>} : memref<1x32x1xf32, #tpu.memory_space<vmem>>, vector<1x32x1xf32>,
    return
  }
  func.func @transform_0(%arg0: i32, %arg1: i32) -> (i32, i32, i32) {
    %c0_i32 = arith.constant 0 : i32
    %c0_i32_0 = arith.constant 0 : i32
    return %arg0, %c0_i32, %arg1 : i32, i32, i32
  }
  func.func @transform_1(%arg0: i32, %arg1: i32) -> (i32, i32) {
    %c0_i32 = arith.constant 0 : i32
    %c0_i32_0 = arith.constant 0 : i32
    %c0_i32_1 = arith.constant 0 : i32
    return %c0_i32, %c0_i32_0 : i32, i32
  }
  func.func @transform_2(%arg0: i32, %arg1: i32) -> (i32, i32, i32) {
    %c0_i32 = arith.constant 0 : i32
    %c0_i32_0 = arith.constant 0 : i32
    %c0_i32_1 = arith.constant 0 : i32
    return %arg0, %c0_i32, %c0_i32_0 : i32, i32, i32
  }
  func.func @transform_3(%arg0: i32, %arg1: i32) -> (i32, i32, i32) {
    %c0_i32 = arith.constant 0 : i32
    %c0_i32_0 = arith.constant 0 : i32
    %c0_i32_1 = arith.constant 0 : i32
    return %arg0, %c0_i32, %c0_i32_0 : i32, i32, i32
  }
}

</mosaic_0001>

<bundles_post_ra>
// kernel: tpu_custom_call.1
= control target key start
LH: loop header
LB: loop body
LE: loop exit
PB: predicated region body
PF: predicated region fallthrough
CT: control target
= control target key end

     0   :  { %s593_s12 = smov 0   ;;  %s595_s13 = smov 0   ;;  %s685_s0 = inlined_call_operand.vmem [shape: f32[2,4,256], index: 0, kind: input, shape index: {}]   ;;  %s686_s1 = inlined_call_operand.vmem [shape: f32[32,4], index: 1, kind: input, shape index: {}]   ;;  %s687_s2 = inlined_call_operand.vmem [shape: f32[2,32,1], index: 2, kind: output, shape index: {0}]   ;;  %s688_s3 = inlined_call_operand.vmem [shape: f32[2,32,1], index: 3, kind: output, shape index: {1}]  }
   0x1   :  { %s597_s14 = smov 0  }
   0x2 LB: > { %s26_s15 = sadd.s32 1, %s566_s13  ;;  %p502_p0 = scmp.ge.s32.totalorder %s570_s14, 1  ;;  %s570_s14 = sphi %s597_s14, %s14_s14   ;;  %s566_s13 = sphi %s595_s13, %s690_s13   ;;  %s562_s12 = sphi %s593_s12, %s689_s12  }
   0x3   : > { %p28_p1 = scmp.ge.s32.totalorder %s26_s15, 2  ;;  %p159_p2 = scmp.lt.s32.totalorder %s570_s14, 3 }
   0x5   : > { %s692_s15 = smov (%p28_p1, %s26_s15), 0  ;;  %p160_p3 = pnand %p502_p0, %p159_p2 }
   0x6   : > { %p193_p4 = scmp.lt.s32.totalorder (!%p160_p3), %s562_s12, 1  ;;  %v572_v0 = vmov (!%p160_p3), 0.0   ;;  %vm245_vm0 = vcmask (!%p160_p3), 1043456   ;;  %v226_v3 = vld [vmem:[%s686_s1] sm:$0xff] (!%p160_p3)  ;;  %vm232_vm1 = vcmask (!%p160_p3), 31744   ;;  %v228_v4 = vld [vmem:[%s686_s1 + $0x10] sm:$0xff] (!%p160_p3) }
   0x7   : > { %163 = sbr.rel (%p160_p3) target bundleno = 394 (0x18a), region = 28  ;;  %314 = vmatprep.mubr.f32.mxu0 (!%p160_p3), %v572_v0  ;;  %326 = vmatprep.mubr.f32.mxu1 (!%p160_p3), %v572_v0  ;;  %v229_v5 = vld [vmem:[%s686_s1 + $0x18] sm:$0xff] (!%p160_p3)  ;;  %v227_v6 = vld [vmem:[%s686_s1 + $0x8] sm:$0xff] (!%p160_p3)  ;;  %vm216_vm2 = vcmask (!%p160_p3), 7168  }
   0xe   : > { %s694_s12 = smov (!%p193_p4, %s562_s12), 1 }
   0xf   : > { %s517_s16 = sshll.u32 %s694_s12, 3  ;;  %s518_s28 = sshll.u32 %s694_s12, 5 }
  0x10   : > { %s200_s19 = scalar_lea.vmem %s685_s0, %s517_s16  ;;  %s629_s4 = scalar_lea.vmem %s687_s2, %s518_s28 }
  0x11   : > { %v225_v1 = vld [vmem:[%s200_s19] sm:$0xff]  ;;  %s634_s7 = scalar_lea.vmem %s688_s3, %s518_s28  ;;  %219 = vst.msk [vmem:[%s629_s4 + $0x10] sm:$0xff] %vm216_vm2, %v572_v0  ;;  %217 = vst.msk [vmem:[%s629_s4] sm:$0xff] %vm216_vm2, %v572_v0 }
  0x12   : > { %v231_v2 = vcombine.high %v225_v1, %v225_v1  ;;  %218 = vst.msk [vmem:[%s629_s4 + $0x8] sm:$0xff] %vm216_vm2, %v572_v0  ;;  %220 = vst.msk [vmem:[%s629_s4 + $0x18] sm:$0xff] %vm216_vm2, %v572_v0 }
  0x13   : > { %221 = vst.msk [vmem:[%s634_s7] sm:$0xff] %vm216_vm2, %v572_v0  ;;  %222 = vst.msk [vmem:[%s634_s7 + $0x8] sm:$0xff] %vm216_vm2, %v572_v0 }
  0x14   : > { %509 = vmatprep.subr.msk.mxu0 %vm245_vm0, %v231_v2  ;;  %520 = vmatprep.subr.msk.mxu1 %vm245_vm0, %v231_v2  ;;  %223 = vst.msk [vmem:[%s634_s7 + $0x10] sm:$0xff] %vm216_vm2, %v572_v0  ;;  %224 = vst.msk [vmem:[%s634_s7 + $0x18] sm:$0xff] %vm216_vm2, %v572_v0 }
  0x15   : > { %510 = vmatpush1.msk.msra.mxu0 %vm245_vm0, %v225_v1  ;;  %521 = vmatpush1.msk.msra.mxu1 %vm245_vm0, %v225_v1 }
  0x16   : > { %511 = vmatmul.mubr.msk.f32.vlgmr.msra.gmra.mrb[0].mxu0 %vm232_vm1, %v226_v3  ;;  %513 = vmatmul.mubr.msk.f32.vlgmr.msra.gmra.mrb[0].mxu1 %vm232_vm1, %v228_v4 }
  0x17   : > { %332 = vmatprep.mubr.f32.mxu1 %v572_v0  ;;  %320 = vmatprep.mubr.f32.mxu0 %v572_v0 }
  0x18   : > { %v341_v31 = vld [vmem:[%s629_s4 + $0x10] sm:$0xff]  ;;  %v339_v32 = vld [vmem:[%s629_s4] sm:$0xff] }
  0x19   : > { %v342_v37 = vld [vmem:[%s629_s4 + $0x18] sm:$0xff]  ;;  %v340_v44 = vld [vmem:[%s629_s4 + $0x8] sm:$0xff] }
  0x1a   : > { %514 = vmatmul.mubr.msk.f32.gmra.mrb[2].mxu1 %vm232_vm1, %v229_v5  ;;  %512 = vmatmul.mubr.msk.f32.gmra.mrb[2].mxu0 %vm232_vm1, %v227_v6  ;;  %v364_v38 = vld [vmem:[%s634_s7] sm:$0xff]  ;;  %v365_v43 = vld [vmem:[%s634_s7 + $0x8] sm:$0xff] }
  0x1b   : > { %v367_v49 = vld [vmem:[%s634_s7 + $0x18] sm:$0xff]  ;;  %v366_v50 = vld [vmem:[%s634_s7 + $0x10] sm:$0xff] }
  0xe9   : > { %v316_v7 = vpop.f32.mrb[0].mxu0  ;;  %v328_v8 = vpop.f32.mrb[0].mxu1 }
  0xea   : > { %v368_v9 = vmul.f32 %v316_v7, %v316_v7  ;;  %v372_v10 = vmul.f32 %v328_v8, %v328_v8  ;;  %v318_v11 = vpop.f32.mrb[1].mxu0  ;;  %v330_v12 = vpop.f32.mrb[1].mxu1 }
  0xeb   : > { %v369_v13 = vmul.f32 %v318_v11, %v318_v11  ;;  %v373_v14 = vmul.f32 %v330_v12, %v330_v12  ;;  %v349_v15 = vadd.f32 %v330_v12, %v328_v8  ;;  %v343_v16 = vadd.f32 %v318_v11, %v316_v7 }
  0xed   : > { %350 = vadd.xlane.f32.xlu1 %v349_v15  ;;  %v334_v17 = vpop.f32.mrb[2].mxu1  ;;  %344 = vadd.xlane.f32.xlu0 %v343_v16  ;;  %v322_v18 = vpop.f32.mrb[2].mxu0  ;;  %v376_v19 = vadd.f32 %v369_v13, %v368_v9  ;;  %v382_v20 = vadd.f32 %v373_v14, %v372_v10 }
  0xee   : > { %v374_v21 = vmul.f32 %v334_v17, %v334_v17  ;;  %v370_v22 = vmul.f32 %v322_v18, %v322_v18  ;;  %v336_v23 = vpop.f32.mrb[3].mxu1  ;;  %v324_v24 = vpop.f32.mrb[3].mxu0 }
  0xef   : > { %v352_v25 = vadd.f32 %v336_v23, %v334_v17  ;;  %v375_v26 = vmul.f32 %v336_v23, %v336_v23  ;;  %v346_v27 = vadd.f32 %v324_v24, %v322_v18  ;;  %v371_v28 = vmul.f32 %v324_v24, %v324_v24 }
  0xf1   : > { %353 = vadd.xlane.f32.xlu1 %v352_v25  ;;  %377 = vadd.xlane.f32.xlu0 %v376_v19  ;;  %v379_v29 = vadd.f32 %v371_v28, %v370_v22  ;;  %v385_v30 = vadd.f32 %v375_v26, %v374_v21 }
  0xf5   : > { %380 = vadd.xlane.f32.xlu1 %v379_v29  ;;  %347 = vadd.xlane.f32.xlu0 %v346_v27 }
  0xf9   : > { %386 = vadd.xlane.f32.xlu1 %v385_v30  ;;  %383 = vadd.xlane.f32.xlu0 %v382_v20 }
 0x17a   : > { %v351_v33 = vpop.xlane.xlu1 %350  ;;  %v345_v34 = vpop.xlane.xlu0 %344 }
 0x17b   : > { %v357_v35 = vadd.f32 %v351_v33, %v341_v31  ;;  %v355_v36 = vadd.f32 %v345_v34, %v339_v32 }
 0x17d   : > { %362 = vst.msk [vmem:[%s629_s4 + $0x10] sm:$0xff] %vm216_vm2, %v357_v35  ;;  %360 = vst.msk [vmem:[%s629_s4] sm:$0xff] %vm216_vm2, %v355_v36 }
 0x17e   : > { %v354_v39 = vpop.xlane.xlu1 %353  ;;  %v378_v40 = vpop.xlane.xlu0 %377 }
 0x17f   : > { %v358_v41 = vadd.f32 %v354_v39, %v342_v37  ;;  %v388_v42 = vadd.f32 %v378_v40, %v364_v38 }
 0x181   : > { %363 = vst.msk [vmem:[%s629_s4 + $0x18] sm:$0xff] %vm216_vm2, %v358_v41  ;;  %392 = vst.msk [vmem:[%s634_s7] sm:$0xff] %vm216_vm2, %v388_v42 }
 0x182   : > { %v381_v45 = vpop.xlane.xlu1 %380  ;;  %v348_v46 = vpop.xlane.xlu0 %347 }
 0x183   : > { %v389_v47 = vadd.f32 %v381_v45, %v365_v43  ;;  %v356_v48 = vadd.f32 %v348_v46, %v340_v44 }
 0x185   : > { %393 = vst.msk [vmem:[%s634_s7 + $0x8] sm:$0xff] %vm216_vm2, %v389_v47  ;;  %361 = vst.msk [vmem:[%s629_s4 + $0x8] sm:$0xff] %vm216_vm2, %v356_v48 }
 0x186   : > { %v387_v51 = vpop.xlane.xlu1 %386  ;;  %v384_v52 = vpop.xlane.xlu0 %383 }
 0x187   : > { %v391_v53 = vadd.f32 %v387_v51, %v367_v49  ;;  %v390_v54 = vadd.f32 %v384_v52, %v366_v50 }
 0x189   : > { %395 = vst.msk [vmem:[%s634_s7 + $0x18] sm:$0xff] %vm216_vm2, %v391_v53  ;;  %394 = vst.msk [vmem:[%s634_s7 + $0x10] sm:$0xff] %vm216_vm2, %v390_v54 }
 0x18a PF: > { %s14_s14 = sadd.s32 1, %s570_s14   ;;  %s689_s12 = smov %s566_s13 }
 0x18b   : > { %p11_p5 = scmp.ge.s32.totalorder %s14_s14, 4   ;;  %s690_s13 = smov %s692_s15 }
 0x18d   :  { %13 = sbr.rel (!%p11_p5) target bundleno = 2 (0x2), region = 74 }

</bundles_post_ra>
